<compile_context>
chip_gen: v6e
topology: v6e:2x2x1
jax: 0.10.0
libtpu: 0.0.40
codegen_flags: <defaults>
</compile_context>

<pallas_src>
import jax
import jax.numpy as jnp
from jax.experimental import pallas as pl
from jax.experimental.pallas import tpu as pltpu


def rotary_kernel(coef_ref, x_ref, o_ref):
    # coef_ref: (4, TS, D2) f32, rows = [c_ll, c_lr, c_rl, c_rr] where
    #   new_left  = x_left * c_ll + x_right * c_lr
    #   new_right = x_left * c_rl + x_right * c_rr
    # x_ref / o_ref: (1, TS, D)
    D2 = coef_ref.shape[2]

    x = x_ref[...]                                   # (1, TS, D)
    x_left = x[:, :, :D2].astype(jnp.float32)        # (1, TS, D2)
    x_right = x[:, :, D2:].astype(jnp.float32)       # (1, TS, D2)

    c_ll = coef_ref[0]                               # (TS, D2), broadcasts over batch dim
    c_lr = coef_ref[1]
    c_rl = coef_ref[2]
    c_rr = coef_ref[3]

    new_left = x_left * c_ll + x_right * c_lr        # independent of new_right -> ILP
    new_right = x_left * c_rl + x_right * c_rr

    # Single full-width store (one concat) instead of two masked half-stores.
    o_ref[...] = jnp.concatenate([new_left, new_right], axis=-1).astype(o_ref.dtype)


def _choose_s_tile(S, D, itemsize):
    """Largest S-tile that is a multiple of 8 and divides S (or the full S),
    sized so ALL double-buffered slabs (x in, out, f32 coef) stay ~<=12 MiB,
    fitting v5e's 16 MiB default scoped VMEM as well as v6e/v7x."""
    if S % 8 != 0:
        return S                      # full-extent block is always legal
    # Per S-row, double-buffered: x (2*D*isz) + out (2*D*isz) + coef (2*4*(D/2)*4).
    bytes_per_row = D * (4 * itemsize + 16)
    budget = 12 * 1024 * 1024
    ts = max(8, min(S, budget // max(1, bytes_per_row)))
    ts -= ts % 8
    ts = max(ts, 8)
    while ts > 8 and S % ts != 0:
        ts -= 8
    return ts


def rotary_embedding(x, freq_left, freq_right, *, s_tile=None):
    B, S, D = x.shape
    D2 = D // 2

    # Hoisted trig (batch-independent), fused into the four mixing tables.
    t = jnp.arange(S, dtype=jnp.float32)
    ang_l = t[:, None] * freq_left.astype(jnp.float32)[None, :]   # (S, D2)
    ang_r = t[:, None] * freq_right.astype(jnp.float32)[None, :]  # (S, D2)
    cos_l, sin_l = jnp.cos(ang_l), jnp.sin(ang_l)
    cos_r, sin_r = jnp.cos(ang_r), jnp.sin(ang_r)
    coef = jnp.stack(
        [cos_l, -sin_l, cos_l * sin_r, cos_r - sin_l * sin_r], axis=0
    )  # (4, S, D2) f32

    ts = _choose_s_tile(S, D, jnp.dtype(x.dtype).itemsize) if s_tile is None else s_tile
    num_s = pl.cdiv(S, ts)

    return pl.pallas_call(
        rotary_kernel,
        out_shape=jax.ShapeDtypeStruct((B, S, D), x.dtype),
        # S-tiles outer, batch inner: the coef tile's block index is unchanged
        # across the inner B steps, so it is not re-fetched per batch.
        grid=(num_s, B),
        in_specs=[
            pl.BlockSpec((4, ts, D2), lambda s, b: (0, s, 0)),
            pl.BlockSpec((1, ts, D), lambda s, b: (b, s, 0)),
        ],
        out_specs=pl.BlockSpec((1, ts, D), lambda s, b: (b, s, 0)),
        compiler_params=pltpu.CompilerParams(
            dimension_semantics=("parallel", "parallel"),
        ),
    )(coef, x)


def rotary_reference(x, freq_left, freq_right):
    # Pure-JAX replica of the PyTorch forward (sequential update, like torch).
    S = x.shape[-2]
    D2 = freq_left.shape[0]
    t = jnp.arange(S, dtype=jnp.float32)
    freqs_l = jnp.einsum("i,j->ij", t, freq_left)
    freqs_r = jnp.einsum("i,j->ij", t, freq_right)
    x_left, x_right = x[..., :D2], x[..., D2:]
    x_left = x_left * jnp.cos(freqs_l) - x_right * jnp.sin(freqs_l)
    x_right = x_left * jnp.sin(freqs_r) + x_right * jnp.cos(freqs_r)
    return jnp.concatenate([x_left, x_right], axis=-1)


if __name__ == "__main__":
    # config.n_embd = 32 -> dim = 32, dim//2 = 16
    B, S, D = 2, 8, 32
    D2 = D // 2

    # Deterministic buffer init, exactly mirroring the PyTorch expression:
    # 10000 ** (arange(0, dim//2).float() / dim // 2)  == 10000 ** ((i/dim)//2)
    exponent = (jnp.arange(D2, dtype=jnp.float32) / D) // 2
    freq_left = 10000.0 ** exponent
    freq_right = 10000.0 ** exponent

    key = jax.random.PRNGKey(0)
    x = jax.random.normal(key, (B, S, D), dtype=jnp.float32)

    out = rotary_embedding(x, freq_left, freq_right)
    out = jax.block_until_ready(out)

    ref = rotary_reference(x, freq_left, freq_right)
    assert out.shape == (B, S, D)
    assert jnp.allclose(out, ref, atol=1e-5, rtol=1e-5), "mismatch vs reference"

    print("KERNEL_OK")
</pallas_src>

<mosaic_0001>
module attributes {stable_mosaic.version = 11 : i64} {
  func.func @rotary_kernel(%arg0: i32, %arg1: i32, %arg2: memref<4x8x16xf32, #tpu.memory_space<vmem>>, %arg3: memref<1x8x32xf32, #tpu.memory_space<vmem>>, %arg4: memref<1x8x32xf32, #tpu.memory_space<vmem>>) attributes {dimension_semantics = [#tpu.dimension_semantics<parallel>, #tpu.dimension_semantics<parallel>], iteration_bounds = array<i64: 1, 2>, scalar_prefetch = 0 : i64, scratch_operands = 0 : i64, tpu.core_type = #tpu.core_type<tc>, window_params = [{transform_indices = @transform_0, window_bounds = array<i64: 4, 8, 16>}, {transform_indices = @transform_1, window_bounds = array<i64: 1, 8, 32>}, {transform_indices = @transform_2, window_bounds = array<i64: 1, 8, 32>}]} {
    %c0 = arith.constant 0 : index
    %c0_0 = arith.constant 0 : index
    %c0_1 = arith.constant 0 : index
    %0 = vector.load %arg3[%c0, %c0_0, %c0_1] : memref<1x8x32xf32, #tpu.memory_space<vmem>>, vector<1x8x32xf32>
    %1 = vector.extract_strided_slice %0 {offsets = [0, 0, 0], sizes = [1, 8, 16], strides = [1, 1, 1]} : vector<1x8x32xf32> to vector<1x8x16xf32>
    %2 = vector.extract_strided_slice %0 {offsets = [0, 0, 16], sizes = [1, 8, 16], strides = [1, 1, 1]} : vector<1x8x32xf32> to vector<1x8x16xf32>
    %c0_2 = arith.constant 0 : index
    %c0_3 = arith.constant 0 : index
    %c0_4 = arith.constant 0 : index
    %3 = vector.load %arg2[%c0_2, %c0_3, %c0_4] : memref<4x8x16xf32, #tpu.memory_space<vmem>>, vector<1x8x16xf32>
    %4 = vector.shape_cast %3 : vector<1x8x16xf32> to vector<8x16xf32>
    %c1 = arith.constant 1 : index
    %c0_5 = arith.constant 0 : index
    %c0_6 = arith.constant 0 : index
    %5 = vector.load %arg2[%c1, %c0_5, %c0_6] : memref<4x8x16xf32, #tpu.memory_space<vmem>>, vector<1x8x16xf32>
    %6 = vector.shape_cast %5 : vector<1x8x16xf32> to vector<8x16xf32>
    %c2 = arith.constant 2 : index
    %c0_7 = arith.constant 0 : index
    %c0_8 = arith.constant 0 : index
    %7 = vector.load %arg2[%c2, %c0_7, %c0_8] : memref<4x8x16xf32, #tpu.memory_space<vmem>>, vector<1x8x16xf32>
    %8 = vector.shape_cast %7 : vector<1x8x16xf32> to vector<8x16xf32>
    %c3 = arith.constant 3 : index
    %c0_9 = arith.constant 0 : index
    %c0_10 = arith.constant 0 : index
    %9 = vector.load %arg2[%c3, %c0_9, %c0_10] : memref<4x8x16xf32, #tpu.memory_space<vmem>>, vector<1x8x16xf32>
    %10 = vector.shape_cast %9 : vector<1x8x16xf32> to vector<8x16xf32>
    %11 = vector.shape_cast %4 : vector<8x16xf32> to vector<1x8x16xf32>
    %12 = arith.mulf %1, %11 : vector<1x8x16xf32>
    %13 = vector.shape_cast %6 : vector<8x16xf32> to vector<1x8x16xf32>
    %14 = arith.mulf %2, %13 : vector<1x8x16xf32>
    %15 = arith.addf %12, %14 : vector<1x8x16xf32>
    %16 = vector.shape_cast %8 : vector<8x16xf32> to vector<1x8x16xf32>
    %17 = arith.mulf %1, %16 : vector<1x8x16xf32>
    %18 = vector.shape_cast %10 : vector<8x16xf32> to vector<1x8x16xf32>
    %19 = arith.mulf %2, %18 : vector<1x8x16xf32>
    %20 = arith.addf %17, %19 : vector<1x8x16xf32>
    %21 = tpu.concatenate %15, %20 in 2 : vector<1x8x16xf32>, vector<1x8x16xf32> -> vector<1x8x32xf32>
    %c0_11 = arith.constant 0 : index
    %c0_12 = arith.constant 0 : index
    %c0_13 = arith.constant 0 : index
    %22 = vector.load %arg4[%c0_11, %c0_12, %c0_13] : memref<1x8x32xf32, #tpu.memory_space<vmem>>, vector<1x8x32xf32>
    tpu.vector_store %arg4[%c0_11, %c0_12, %c0_13], %21 {strides = array<i32>} : memref<1x8x32xf32, #tpu.memory_space<vmem>>, vector<1x8x32xf32>,
    return
  }
  func.func @transform_0(%arg0: i32, %arg1: i32) -> (i32, i32, i32) {
    %c0_i32 = arith.constant 0 : i32
    %c0_i32_0 = arith.constant 0 : i32
    %c0_i32_1 = arith.constant 0 : i32
    return %c0_i32, %arg0, %c0_i32_0 : i32, i32, i32
  }
  func.func @transform_1(%arg0: i32, %arg1: i32) -> (i32, i32, i32) {
    %c0_i32 = arith.constant 0 : i32
    %c0_i32_0 = arith.constant 0 : i32
    return %arg1, %arg0, %c0_i32 : i32, i32, i32
  }
  func.func @transform_2(%arg0: i32, %arg1: i32) -> (i32, i32, i32) {
    %c0_i32 = arith.constant 0 : i32
    %c0_i32_0 = arith.constant 0 : i32
    return %arg1, %arg0, %c0_i32 : i32, i32, i32
  }
}

</mosaic_0001>

<bundles_post_ra>
// kernel: tpu_custom_call.1
= control target key start
LH: loop header
LB: loop body
LE: loop exit
PB: predicated region body
PF: predicated region fallthrough
CT: control target
= control target key end

     0   :  { %7 = vsyncpa [#allocation3], 0  ;;  %s772_s0 = inlined_call_operand.hbm [shape: f32[4,8,16], index: 0, kind: input, shape index: {}]   ;;  %s773_s1 = inlined_call_operand.hbm [shape: f32[2,8,32], index: 1, kind: input, shape index: {}]   ;;  %s774_s2 = inlined_call_operand.hbm [shape: f32[2,8,32], index: 2, kind: output, shape index: {}]  }
   0x1   :  { %8 = vsyncpa [#allocation6], 0 }
   0x2   :  { %10 = vsyncpa [#allocation6 + $0x1], 0 }
   0x3   :  { %11 = vsyncpa [#allocation4], 0 }
   0x4   :  { %13 = vsyncpa [#allocation4 + $0x1], 0  ;;  %s599_s9 = smov 0   ;;  %s601_s10 = smov 0  }
   0x5   :  { %s603_s11 = smov 0   ;;  %s605_s12 = smov 0  }
   0x6   :  { %s607_s13 = smov 0   ;;  %s609_s14 = smov 0  }
   0x7 LB: > { %s345_s15 = sadd.s32 4294967295, %s575_s14   ;;  %s346_s16 = sadd.s32 4294967294, %s575_s14   ;;  %s575_s14 = sphi %s609_s14, %s19_s14   ;;  %s571_s13 = sphi %s607_s13, %s792_s13   ;;  %s567_s12 = sphi %s605_s12, %s791_s12   ;;  %s563_s11 = sphi %s603_s11, %s790_s11   ;;  %s559_s10 = sphi %s601_s10, %s789_s10   ;;  %s555_s9 = sphi %s599_s9, %s788_s9  }
   0x8   : > { %p79_p0 = scmp.ne.s32.totalorder %s559_s10, %s555_s9  ;;  %p633_p1 = scmp.eq.s32.totalorder %s345_s15, 0 }
   0x9   : > { %p637_p2 = scmp.eq.s32.totalorder %s345_s15, 1  ;;  %p111_p3 = scmp.eq.s32.totalorder %s346_s16, 1 }
   0xa   : > { %p643_p4 = por %p633_p1, %p79_p0  ;;  %p347_p5 = scmp.ge.s32.totalorder %s575_s14, 1 }
   0xb   : > { %p648_p6 = por %p111_p3, %p79_p0  ;;  %p118_p7 = scmp.lt.s32.totalorder %s575_s14, 3 }
   0xc   : > { %s778_s19 = scalar_select %p643_p4, 1, 0 }
   0xd   : > { %s779_s20 = scalar_select %p648_p6, 1, 0 }
   0xe   : > { %p653_p8 = pnand %p347_p5, %p118_p7  ;;  %s577_s22 = smov [#allocation2]  }
   0xf   : > { %s132_s23 = sshll.u32 %s577_s22, 4  ;;  %s28_s25 = sadd.s32 1, %s571_s13  ;;  %s133_s23 = int_to_ptr.vmem [resolvable:$true] %s132_s23 }
  0x10   : > { %p368_p9 = pneg %p653_p8  ;;  %s448_s26 = scalar_lea.vmem %s133_s23, 512 }
  0x11   : > { %p449_p13 = scmp.ne.s32.totalorder %s133_s23, %s448_s26  ;;  %p456_p5 = scmp.lt.s32.totalorder %s133_s23, %s133_s23 }
  0x12   : > { %p662_p11 = pnand %p368_p9, %p633_p1  ;;  %p457_p7 = scmp.lt.s32.totalorder %s448_s26, %s448_s26 }
  0x14   : > { %p439_p12 = pneg %p662_p11  ;;  %p458_p6 = por %p457_p7, %p456_p5 }
  0x16   : > { %p451_p0 = pnand %p449_p13, %p439_p12 }
  0x18   : > { %p452_p3 = pneg %p451_p0 }
  0x1a   : > { %p459_p4 = pnand %p458_p6, %p452_p3 }
  0x1c   : > { %462 = shalt.err (!%p459_p4)
}
  0x1d   : > { %s578_s27 = smov 128   ;;  %s579_s28 = smov 8  }
  0x1e   : > { %371 = dma.hbm_to_vmem [thread:$0]  (!%p662_p11), %s772_s0, 512, %s133_s23, [#allocation3], %s578_s27, %s578_s27, %s579_s28  }
  0x1f   : > { %p29_p6 = scmp.ge.s32.totalorder %s28_s25, 2  ;;  %s66_s3 = sadd.s32 1, %s563_s11 }
  0x20   : > { %p73_p4 = scmp.ne.s32.totalorder %s563_s11, %s559_s10  ;;  %p74_p9 = scmp.eq.s32.totalorder %s575_s14, 0 }
  0x21   : > { %s794_s25 = smov (%p29_p6, %s28_s25), 0  ;;  %p381_p0 = scmp.lt.s32.totalorder %s575_s14, 2 }
  0x22   : > { %p680_p12 = por %p74_p9, %p73_p4  ;;  %p686_p13 = por %p637_p2, %p73_p4 }
  0x23   : > { %s61_s6 = ssub.s32 %s571_s13, %s794_s25  ;;  %s146_s7 = sand.u32 1, %s563_s11  }
  0x24   : > { %p64_p11 = scmp.eq.s32.totalorder %s61_s6, 0  ;;  %s350_s8 = sshll.u32 %s146_s7, 3 }
  0x25   : > { %s351_s16 = sshll.u32 %s571_s13, 7  ;;  %s150_s26 = scalar_lea.vmem [#allocation5], %s350_s8 }
  0x26   : > { %s695_s15 = scalar_select %p64_p11, %s563_s11, %s66_s3  }
  0x27   : > { %s156_s24 = scalar_lea.hbm %s773_s1, %s351_s16  ;;  %s158_s27 = sshll.u32 %s150_s26, 4  ;;  %s159_s27 = int_to_ptr.vmem [resolvable:$true] %s158_s27 }
  0x28   : > { %p703_p2 = pnand %p381_p0, %p680_p12  ;;  %s147_s28 = scalar_lea.sflag [#allocation6], %s146_s7 }
  0x29   : > { %s476_s29 = scalar_lea.vmem %s159_s27, 128  ;;  %s580_s30 = smov [#allocation5]  }
  0x2a   : > { %p465_p3 = pneg %p703_p2  ;;  %p477_p5 = scmp.ne.s32.totalorder %s159_s27, %s476_s29 }
  0x2b   : > { %s481_s3 = sshll.u32 %s580_s30, 4  ;;  %s482_s3 = int_to_ptr.vmem [resolvable:$false] %s481_s3 }
  0x2c   : > { %p479_p7 = pnand %p477_p5, %p465_p3  ;;  %s483_s6 = scalar_lea.vmem %s482_s3, 256 }
  0x2d   : > { %p484_p4 = scmp.lt.s32.totalorder %s159_s27, %s482_s3  ;;  %p485_p9 = scmp.lt.s32.totalorder %s483_s6, %s476_s29 }
  0x2e   : > { %p480_p6 = pneg %p479_p7 }
  0x2f   : > { %p486_p11 = por %p485_p9, %p484_p4 }
  0x31   : > { %p487_p10 = pnand %p486_p11, %p480_p6 }
  0x33   : > { %490 = shalt.err (!%p487_p10)
}
  0x34   : > { %375 = dma.hbm_to_vmem [thread:$0]  (!%p703_p2), %s156_s24, 128, %s159_s27, %s147_s28  }
  0x35   : > { %167 = sbr.rel (%p653_p8) target bundleno = 427 (0x1ab), region = 28 }
  0x3a   : > { %542 = dma.done.wait (%p633_p1), [#allocation3], 512  }
  0x3b   : > { %544 = vsyncadd (%p633_p1), [#allocation3], 4294966784  ;;  %s718_s4 = sand.u32 1, %s559_s10   ;;  %p785_p10 = scmp.ne.s32.totalorder %s778_s19, 0 }
  0x3c   : > { %s354_s7 = sshll.u32 %s718_s4, 3  ;;  %s174_s8 = scalar_lea.sflag [#allocation6], %s718_s4 }
  0x3d   : > { %s177_s16 = scalar_lea.vmem [#allocation5], %s354_s7 }
  0x3e   : > { %546 = dma.done.wait (%p785_p10), %s174_s8, 128  }
  0x3f   : > { %548 = vsyncadd (%p785_p10), %s174_s8, 4294967168  ;;  %v205_v0 = vld [vmem:[#allocation2 + $0x18] sm:$0xff]  ;;  %s581_s21 = smov 16   ;;  %v201_v1 = vld [vmem:[#allocation2 + $0x8] sm:$0xff]  ;;  %s582_s17 = smov 112   ;;  %vm232_vm0 = vcmask 130048  }
  0x40   : > { %219 = vrot.lane.b32.xlu0 %v205_v0, %s581_s21  ;;  %v198_v2 = vld [vmem:[%s177_s16] sm:$0xff]  ;;  %v203_v7 = vld [vmem:[#allocation2 + $0x10] sm:$0xff]  ;;  %s357_s19 = sshll.u32 %s567_s12, 7  ;;  %s197_s22 = scalar_lea.vmem [#allocation7], %s354_s7  ;;  %vm234_vm1 = vcmask 261120  }
  0x41   : > { %v217_v8 = vmul.f32 %v203_v7, %v198_v2  ;;  %v199_v11 = vld [vmem:[#allocation2] sm:$0xff]  ;;  %s251_s23 = sshll.u32 %s197_s22, 4  ;;  %s730_s27 = scalar_lea.hbm %s774_s2, %s357_s19  ;;  %s252_s23 = int_to_ptr.vmem [resolvable:$true] %s251_s23 }
  0x42   : > { %v206_v12 = vmul.f32 %v199_v11, %v198_v2  ;;  %s237_s18 = scalar_lea.sflag [#allocation4], %s718_s4  ;;  %s491_s28 = scalar_lea.vmem %s252_s23, 128 }
  0x43   : > { %p492_p1 = scmp.ne.s32.totalorder %s252_s23, %s491_s28  ;;  %s583_s12 = smov [#allocation7]  }
  0x44   : > { %208 = vrot.lane.b32.xlu0 %v201_v1, %s581_s21  ;;  %s495_s29 = sshll.u32 %s583_s12, 4  ;;  %s496_s29 = int_to_ptr.vmem [resolvable:$false] %s495_s29 }
  0x45   : > { %p493_p8 = pnand %p492_p1, %p686_p13  ;;  %s497_s30 = scalar_lea.vmem %s496_s29, 256 }
  0x46   : > { %p498_p0 = scmp.lt.s32.totalorder %s252_s23, %s496_s29  ;;  %p499_p2 = scmp.lt.s32.totalorder %s497_s30, %s491_s28 }
  0x47   : > { %p494_p12 = pneg %p493_p8 }
  0x48   : > { %p500_p3 = por %p499_p2, %p498_p0 }
  0x4a   : > { %p501_p5 = pnand %p500_p3, %p494_p12 }
  0xb2   : > { %v220_v3 = vpop.permute.xlu0 %219 }
  0xb3   : > { %v222_v4 = vmul.f32 %v220_v3, %v198_v2 }
  0xb5   : > { %224 = vrot.lane.b32.xlu1 %v222_v4, %s582_s17 }
  0xb6   : > { %v209_v5 = vpop.permute.xlu0 %208 }
  0xb7   : > { %v211_v6 = vmul.f32 %v209_v5, %v198_v2 }
  0xb9   : > { %213 = vrot.lane.b32.xlu1 %v211_v6, %s582_s17 }
 0x127   : > { %v225_v9 = vpop.permute.xlu1 %224 }
 0x128   : > { %v227_v10 = vadd.f32 %v225_v9, %v217_v8 }
 0x12a   : > { %229 = vrot.lane.b32.xlu0 %v227_v10, %s581_s21 }
 0x12b   : > { %v214_v13 = vpop.permute.xlu1 %213 }
 0x12c   : > { %v216_v14 = vadd.f32 %v214_v13, %v206_v12 }
 0x19c   : > { %v230_v15 = vpop.permute.xlu0 %229 }
 0x19d   : > { %v233_v16 = vsel %vm232_vm0, %v216_v14, %v230_v15 }
 0x19e   : > { %235 = vst.msk [vmem:[%s197_s22] sm:$0xff] %vm234_vm1, %v233_v16 }
 0x19f   : > { %504 = shalt.err (!%p501_p5)
}
 0x1a0   : > { %s505_s3 = scalar_lea.hbm %s730_s27, 128  ;;  %s509_s7 = scalar_lea.hbm %s774_s2, 256 }
 0x1a1   : > { %p506_p7 = scmp.ne.s32.totalorder %s730_s27, %s505_s3  ;;  %p510_p9 = scmp.lt.s32.totalorder %s730_s27, %s774_s2 }
 0x1a2   : > { %p511_p11 = scmp.lt.s32.totalorder %s509_s7, %s505_s3 }
 0x1a3   : > { %p507_p6 = pnand %p506_p7, %p686_p13 }
 0x1a4   : > { %p512_p10 = por %p511_p11, %p510_p9 }
 0x1a5   : > { %p508_p4 = pneg %p507_p6 }
 0x1a7   : > { %p513_p1 = pnand %p512_p10, %p508_p4 }
 0x1a9   : > { %516 = shalt.err (!%p513_p1)
}
 0x1aa   : > { %366 = dma.vmem_to_hbm [thread:$0]  (%p686_p13), %s252_s23, 128, %s730_s27, %s237_s18  }
 0x1ab PF: > { %s263_s21 = sand.u32 1, %s555_s9   ;;  %p786_p8 = scmp.ne.s32.totalorder %s779_s20, 0 }
 0x1ac   : > { %p787_p12 = scmp.ge.s32.totalorder %s575_s14, 2  ;;  %s264_s17 = scalar_lea.sflag [#allocation4], %s263_s21 }
 0x1ae   : > { %p377_p0 = pnand %p787_p12, %p786_p8 }
 0x1b0   : > { %p378_p2 = pneg %p377_p0 }
 0x1b2   : > { %550 = dma.done.wait (%p378_p2), %s264_s17, 128  }
 0x1b3   : > { %552 = vsyncadd (%p378_p2), %s264_s17, 4294967168  ;;  %s19_s14 = sadd.s32 1, %s575_s14   ;;  %s788_s9 = smov %s559_s10 }
 0x1b4   : > { %p16_p3 = scmp.ge.s32.totalorder %s19_s14, 4   ;;  %s789_s10 = smov %s563_s11 }
 0x1b5   : > { %s790_s11 = smov %s695_s15  ;;  %s791_s12 = smov %s571_s13 }
 0x1b6   : > { %s792_s13 = smov %s794_s25  ;;  %18 = sbr.rel (!%p16_p3) target bundleno = 7 (0x7), region = 82 }
 0x1bb   :  { %269 = vsyncpa [#allocation3], 1 }
 0x1bc   :  { %271 = vsyncpa [#allocation3 + $0x1], 1 }
 0x1bd   :  { %272 = vsyncpa [#allocation6], 1 }
 0x1be   :  { %274 = vsyncpa [#allocation6 + $0x1], 1 }
 0x1bf   :  { %275 = vsyncpa [#allocation4], 1 }
 0x1c0   :  { %277 = vsyncpa [#allocation4 + $0x1], 1 }

</bundles_post_ra>
